<compile_context>
chip_gen: v5e
topology: v5e:2x2
jax: 0.10.0
libtpu: 0.0.40
codegen_flags: <defaults>
</compile_context>

<pallas_src>
import functools

import jax
import jax.numpy as jnp
from jax.experimental import pallas as pl
from jax.experimental.pallas import tpu as pltpu


# --------------------------------------------------------------------------
# Kernel helpers
# --------------------------------------------------------------------------
def _per_sample_row(vals, l_out):
    """Broadcast one scalar per sample into a (1, samples*l_out) lane row."""
    if len(vals) == 1:
        return vals[0]                      # scalar; broadcasts against (Cout, N)
    return jnp.concatenate(
        [jnp.full((1, l_out), v, jnp.float32) for v in vals], axis=-1)


# --------------------------------------------------------------------------
# Pallas kernel: in-kernel im2col -> one MXU matmul -> MUNIT LN -> LeakyReLU
# --------------------------------------------------------------------------
def _conv1d_block_kernel(x_ref, w_ref, p_ref, o_ref, *,
                         samples, k_taps, l_out, eps, neg_slope):
    # x_ref : (1, Bc, Cin_p, Lpad)  reflect-padded input (channels padded to 8k)
    # w_ref : (Cout, K*Cin_p)       dense im2col weight, (tap, channel) columns
    # p_ref : (Cout, 3)             [conv bias | LN gamma | LN beta]
    # o_ref : (1, Bc, Cout, Lout)
    cout = w_ref.shape[0]
    n = float(cout * l_out)

    # ---- in-kernel im2col --------------------------------------------------
    # Rows ordered (tap, channel) -- each tap piece is a full 8-sublane tile --
    # and samples lane-concatenated, so the conv is ONE dense MXU matmul with
    # N = Bc*Lout lanes.
    xs = [x_ref[0, j] for j in range(samples)]               # (Cin_p, Lpad) each
    taps = []
    for k in range(k_taps):
        pieces = [xs[j][:, k:k + l_out] for j in range(samples)]
        taps.append(pieces[0] if samples == 1
                    else jnp.concatenate(pieces, axis=-1))   # (Cin_p, Bc*Lout)
    cols = taps[0] if k_taps == 1 else jnp.concatenate(taps, axis=0)

    # ---- Conv1d (stride 1, valid) + bias: one MXU matmul --------------------
    acc = jnp.dot(w_ref[...], cols,
                  preferred_element_type=jnp.float32) + p_ref[:, 0:1]

    # ---- MUNIT LayerNorm: per-sample stats over all channels & positions ----
    # Two-pass variance (mean first, then centered sum of squares) for
    # robustness; unbiased (n-1) variance, eps added to the std.
    ch_sum = jnp.sum(acc, axis=0, keepdims=True)             # (1, Bc*Lout)
    means = [jnp.sum(ch_sum[:, j * l_out:(j + 1) * l_out]) * (1.0 / n)
             for j in range(samples)]
    centered = acc - _per_sample_row(means, l_out)
    ch_ssq = jnp.sum(centered * centered, axis=0, keepdims=True)
    invs = [1.0 / (jnp.sqrt(jnp.sum(ch_ssq[:, j * l_out:(j + 1) * l_out])
                            * (1.0 / (n - 1.0))) + eps)
            for j in range(samples)]
    scale = p_ref[:, 1:2] * _per_sample_row(invs, l_out)     # gamma folded in
    y = centered * scale + p_ref[:, 2:3]

    # ---- LeakyReLU(0.2) ------------------------------------------------------
    y = jnp.where(y > 0, y, neg_slope * y)

    # ---- per-sample lane-dense stores (no concatenate copy) ------------------
    for j in range(samples):
        o_ref[0, j] = y[:, j * l_out:(j + 1) * l_out].astype(o_ref.dtype)


# --------------------------------------------------------------------------
# Wrapper
# --------------------------------------------------------------------------
def _pick_samples_per_step(batch, l_out):
    """Samples folded per grid step (chip-agnostic, per perf review):
    target ~1024 output lanes per matmul, keep >= 4 pipelined grid steps when
    the batch allows it, and cap the per-step working set (~512 B per
    sample-lane, double-buffered) well under the 16 MiB (v5e) scoped VMEM."""
    bc = max(1, min(batch, 1024 // max(l_out, 1)))
    bc = min(bc, max(1, (8 << 20) // (512 * max(l_out, 128))))   # VMEM cap
    while bc > 1 and batch // bc < 4:        # keep >= 4 grid steps
        bc -= 1
    while batch % bc:                        # must divide the batch
        bc -= 1
    return bc


def conv1d_block(x, weight, bias, gamma, beta, *, padding, eps=1e-5,
                 neg_slope=0.2, samples_per_step=None):
    """x: (B, Cin, L) f32; weight: (Cout, Cin, K); bias/gamma/beta: (Cout,)."""
    B, Cin, L = x.shape
    Cout, _, K = weight.shape
    Lpad = L + 2 * padding
    Lout = Lpad - K + 1

    # Reflection padding (tiny wrapper glue) -- matches nn.ReflectionPad1d.
    x_pad = jnp.pad(x.astype(jnp.float32),
                    ((0, 0), (0, 0), (padding, padding)), mode="reflect")

    # Pad channels to a multiple of 8 so every per-tap (Cin_p, Lout) slice in
    # the kernel is a full sublane tile (aligned concat / clean layout).  The
    # extra rows are exact zeros and the matching weight columns are zero too.
    Cin_p = -(-Cin // 8) * 8
    if Cin_p != Cin:
        x_pad = jnp.pad(x_pad, ((0, 0), (0, Cin_p - Cin), (0, 0)))
        weight = jnp.pad(weight, ((0, 0), (0, Cin_p - Cin), (0, 0)))
    # Dense im2col weight, columns ordered (tap, channel) to match the kernel.
    w2d = jnp.transpose(weight, (0, 2, 1)).reshape(Cout, K * Cin_p)
    w2d = w2d.astype(jnp.float32)

    # bias / gamma / beta merged into one operand (one VMEM tile, one DMA).
    params = jnp.stack([bias, gamma, beta], axis=1).astype(jnp.float32)  # (Cout,3)

    # Batch grouping: Bc samples per grid step.  Both reshapes below are free
    # contiguous views (no HBM transpose).
    if samples_per_step is None:
        Bc = _pick_samples_per_step(B, Lout)
    else:
        Bc = max(1, min(int(samples_per_step), B))
        while B % Bc:
            Bc -= 1
    G = B // Bc
    xg = x_pad.reshape(G, Bc, Cin_p, Lpad)

    kernel = functools.partial(_conv1d_block_kernel, samples=Bc, k_taps=K,
                               l_out=Lout, eps=eps, neg_slope=neg_slope)

    out = pl.pallas_call(
        kernel,
        out_shape=jax.ShapeDtypeStruct((G, Bc, Cout, Lout), jnp.float32),
        grid_spec=pltpu.PrefetchScalarGridSpec(
            num_scalar_prefetch=0,
            grid=(G,),
            in_specs=[
                pl.BlockSpec((1, Bc, Cin_p, Lpad), lambda g: (g, 0, 0, 0)),  # x_pad
                pl.BlockSpec((Cout, K * Cin_p), lambda g: (0, 0)),           # weight
                pl.BlockSpec((Cout, 3), lambda g: (0, 0)),                   # bias|gamma|beta
            ],
            out_specs=pl.BlockSpec((1, Bc, Cout, Lout), lambda g: (g, 0, 0, 0)),
        ),
        compiler_params=pltpu.CompilerParams(
            dimension_semantics=("parallel",)),
    )(xg, w2d, params)

    return out.reshape(B, Cout, Lout)


# --------------------------------------------------------------------------
# Pure-JAX reference (mirrors the PyTorch forward) for verification.
# --------------------------------------------------------------------------
def conv1d_block_ref(x, weight, bias, gamma, beta, *, padding, eps=1e-5, neg_slope=0.2):
    B, Cin, L = x.shape
    Cout, _, K = weight.shape
    x_pad = jnp.pad(x, ((0, 0), (0, 0), (padding, padding)), mode="reflect")
    Lout = L + 2 * padding - K + 1
    taps = jnp.stack([x_pad[:, :, k:k + Lout] for k in range(K)], axis=-1)  # (B,Cin,Lout,K)
    y = jnp.einsum("bclk,ock->bol", taps, weight) + bias[None, :, None]
    # MUNIT LayerNorm (per-sample over C*L, unbiased std, eps on std)
    flat = y.reshape(B, -1)
    mean = flat.mean(axis=1).reshape(B, 1, 1)
    std = jnp.sqrt(((flat - flat.mean(axis=1, keepdims=True)) ** 2).sum(axis=1)
                   / (flat.shape[1] - 1)).reshape(B, 1, 1)
    y = (y - mean) / (std + eps)
    y = y * gamma[None, :, None] + beta[None, :, None]
    return jnp.where(y > 0, y, neg_slope * y)


if __name__ == "__main__":
    # Conv1dBlock(in_chan=4, out_chan=32, kernel_size=7, stride=1,
    #             activation='lrelu', norm='ln', pad_type='reflect', padding=3)
    B, Cin, L = 2, 4, 128
    Cout, K, PAD = 32, 7, 3

    key = jax.random.PRNGKey(0)
    kx, kw, kb, kg = jax.random.split(key, 4)

    x = jax.random.normal(kx, (B, Cin, L), dtype=jnp.float32)

    # kaiming_normal_(nonlinearity='leaky_relu', a=0): gain = sqrt(2), fan_in = Cin*K
    fan_in = Cin * K
    w_std = (2.0 ** 0.5) / (fan_in ** 0.5)
    weight = jax.random.normal(kw, (Cout, Cin, K), dtype=jnp.float32) * w_std
    # Conv1d default bias init: U(-1/sqrt(fan_in), 1/sqrt(fan_in))
    bias = jax.random.uniform(kb, (Cout,), dtype=jnp.float32,
                              minval=-1.0 / fan_in ** 0.5, maxval=1.0 / fan_in ** 0.5)
    # MUNIT LayerNorm affine: gamma ~ U(0,1), beta = 0
    gamma = jax.random.uniform(kg, (Cout,), dtype=jnp.float32)
    beta = jnp.zeros((Cout,), dtype=jnp.float32)

    ref = conv1d_block_ref(x, weight, bias, gamma, beta, padding=PAD)

    # Default path (heuristic grid sizing: Bc=1, G=2 at this tiny batch).
    out = conv1d_block(x, weight, bias, gamma, beta, padding=PAD)
    out = jax.block_until_ready(out)
    assert out.shape == (B, Cout, L), out.shape
    assert jnp.allclose(out, ref, atol=5e-4, rtol=5e-4), \
        float(jnp.max(jnp.abs(out - ref)))

    # Multi-sample-per-step path (lane-concatenated samples, vectorized LN).
    out2 = conv1d_block(x, weight, bias, gamma, beta, padding=PAD,
                        samples_per_step=2)
    out2 = jax.block_until_ready(out2)
    assert jnp.allclose(out2, ref, atol=5e-4, rtol=5e-4), \
        float(jnp.max(jnp.abs(out2 - ref)))

    print("KERNEL_OK")
</pallas_src>

<mosaic_0001>
module attributes {stable_mosaic.version = 11 : i64} {
  func.func @_conv1d_block_kernel(%arg0: i32, %arg1: memref<1x1x8x134xf32, #tpu.memory_space<vmem>>, %arg2: memref<32x56xf32, #tpu.memory_space<vmem>>, %arg3: memref<32x3xf32, #tpu.memory_space<vmem>>, %arg4: memref<1x1x32x128xf32, #tpu.memory_space<vmem>>) attributes {dimension_semantics = [#tpu.dimension_semantics<parallel>], iteration_bounds = array<i64: 2>, scalar_prefetch = 0 : i64, scratch_operands = 0 : i64, tpu.core_type = #tpu.core_type<tc>, window_params = [{transform_indices = @transform_0, window_bounds = array<i64: 1, 1, 8, 134>}, {pipeline_mode = #tpu.pipeline_mode<synchronous>, transform_indices = @transform_1, window_bounds = array<i64: 32, 56>}, {pipeline_mode = #tpu.pipeline_mode<synchronous>, transform_indices = @transform_2, window_bounds = array<i64: 32, 3>}, {transform_indices = @transform_3, window_bounds = array<i64: 1, 1, 32, 128>}]} {
    %c0 = arith.constant 0 : index
    %c0_0 = arith.constant 0 : index
    %c0_1 = arith.constant 0 : index
    %c0_2 = arith.constant 0 : index
    %0 = vector.load %arg1[%c0, %c0_0, %c0_1, %c0_2] : memref<1x1x8x134xf32, #tpu.memory_space<vmem>>, vector<1x1x8x134xf32>
    %1 = vector.shape_cast %0 : vector<1x1x8x134xf32> to vector<8x134xf32>
    %2 = vector.extract_strided_slice %1 {offsets = [0, 0], sizes = [8, 128], strides = [1, 1]} : vector<8x134xf32> to vector<8x128xf32>
    %3 = vector.extract_strided_slice %1 {offsets = [0, 1], sizes = [8, 128], strides = [1, 1]} : vector<8x134xf32> to vector<8x128xf32>
    %4 = vector.extract_strided_slice %1 {offsets = [0, 2], sizes = [8, 128], strides = [1, 1]} : vector<8x134xf32> to vector<8x128xf32>
    %5 = vector.extract_strided_slice %1 {offsets = [0, 3], sizes = [8, 128], strides = [1, 1]} : vector<8x134xf32> to vector<8x128xf32>
    %6 = vector.extract_strided_slice %1 {offsets = [0, 4], sizes = [8, 128], strides = [1, 1]} : vector<8x134xf32> to vector<8x128xf32>
    %7 = vector.extract_strided_slice %1 {offsets = [0, 5], sizes = [8, 128], strides = [1, 1]} : vector<8x134xf32> to vector<8x128xf32>
    %8 = vector.extract_strided_slice %1 {offsets = [0, 6], sizes = [8, 128], strides = [1, 1]} : vector<8x134xf32> to vector<8x128xf32>
    %9 = tpu.concatenate %2, %3, %4, %5, %6, %7, %8 in 0 : vector<8x128xf32>, vector<8x128xf32>, vector<8x128xf32>, vector<8x128xf32>, vector<8x128xf32>, vector<8x128xf32>, vector<8x128xf32> -> vector<56x128xf32>
    %c0_3 = arith.constant 0 : index
    %c0_4 = arith.constant 0 : index
    %10 = vector.load %arg2[%c0_3, %c0_4] : memref<32x56xf32, #tpu.memory_space<vmem>>, vector<32x56xf32>
    %cst = arith.constant dense<0.000000e+00> : vector<32x128xf32>
    %11 = tpu.matmul %10, %9, %cst {dimension_numbers = #tpu.dot_dimension_numbers<[1], [0], [0], [1], [0, 0, 1, 1], [], []>} : vector<32x56xf32>, vector<56x128xf32>, vector<32x128xf32> -> vector<32x128xf32>
    %c0_5 = arith.constant 0 : index
    %c0_6 = arith.constant 0 : index
    %12 = vector.load %arg3[%c0_5, %c0_6] : memref<32x3xf32, #tpu.memory_space<vmem>>, vector<32x1xf32>
    %13 = vector.broadcast %12 : vector<32x1xf32> to vector<32x128xf32>
    %14 = arith.addf %11, %13 : vector<32x128xf32>
    %cst_7 = arith.constant dense<0.000000e+00> : vector<128xf32>
    %15 = vector.multi_reduction <add>, %14, %cst_7 [0] : vector<32x128xf32> to vector<128xf32>
    %16 = vector.shape_cast %15 : vector<128xf32> to vector<1x128xf32>
    %17 = vector.shape_cast %16 : vector<1x128xf32> to vector<1x1x128xf32>
    %cst_8 = arith.constant dense<0.000000e+00> : vector<1xf32>
    %18 = vector.multi_reduction <add>, %17, %cst_8 [1, 2] : vector<1x1x128xf32> to vector<1xf32>
    %19 = vector.shape_cast %18 : vector<1xf32> to vector<1x1x1xf32>
    %20 = vector.extract %19[0, 0, 0] : f32 from vector<1x1x1xf32>
    %cst_9 = arith.constant 2.44140625E-4 : f32
    %21 = arith.mulf %20, %cst_9 : f32
    %22 = vector.broadcast %21 : f32 to vector<32x128xf32>
    %23 = arith.subf %14, %22 : vector<32x128xf32>
    %24 = arith.mulf %23, %23 : vector<32x128xf32>
    %cst_10 = arith.constant dense<0.000000e+00> : vector<128xf32>
    %25 = vector.multi_reduction <add>, %24, %cst_10 [0] : vector<32x128xf32> to vector<128xf32>
    %26 = vector.shape_cast %25 : vector<128xf32> to vector<1x128xf32>
    %27 = vector.shape_cast %26 : vector<1x128xf32> to vector<1x1x128xf32>
    %cst_11 = arith.constant dense<0.000000e+00> : vector<1xf32>
    %28 = vector.multi_reduction <add>, %27, %cst_11 [1, 2] : vector<1x1x128xf32> to vector<1xf32>
    %29 = vector.shape_cast %28 : vector<1xf32> to vector<1x1x1xf32>
    %30 = vector.extract %29[0, 0, 0] : f32 from vector<1x1x1xf32>
    %cst_12 = arith.constant 2.44200259E-4 : f32
    %31 = arith.mulf %30, %cst_12 : f32
    %32 = math.sqrt %31 : f32
    %cst_13 = arith.constant 9.99999974E-6 : f32
    %33 = arith.addf %32, %cst_13 : f32
    %cst_14 = arith.constant 1.000000e+00 : f32
    %34 = arith.divf %cst_14, %33 : f32
    %c0_15 = arith.constant 0 : index
    %c1 = arith.constant 1 : index
    %35 = vector.load %arg3[%c0_15, %c1] : memref<32x3xf32, #tpu.memory_space<vmem>>, vector<32x1xf32>
    %36 = vector.broadcast %34 : f32 to vector<32x1xf32>
    %37 = arith.mulf %35, %36 : vector<32x1xf32>
    %38 = vector.broadcast %37 : vector<32x1xf32> to vector<32x128xf32>
    %39 = arith.mulf %23, %38 : vector<32x128xf32>
    %c0_16 = arith.constant 0 : index
    %c2 = arith.constant 2 : index
    %40 = vector.load %arg3[%c0_16, %c2] : memref<32x3xf32, #tpu.memory_space<vmem>>, vector<32x1xf32>
    %41 = vector.broadcast %40 : vector<32x1xf32> to vector<32x128xf32>
    %42 = arith.addf %39, %41 : vector<32x128xf32>
    %cst_17 = arith.constant 0.000000e+00 : f32
    %43 = vector.broadcast %cst_17 : f32 to vector<32x128xf32>
    %44 = arith.cmpf ogt, %42, %43 : vector<32x128xf32>
    %cst_18 = arith.constant 2.000000e-01 : f32
    %45 = vector.broadcast %cst_18 : f32 to vector<32x128xf32>
    %46 = arith.mulf %45, %42 : vector<32x128xf32>
    %47 = arith.select %44, %42, %46 : vector<32x128xi1>, vector<32x128xf32>
    %c0_19 = arith.constant 0 : index
    %c0_20 = arith.constant 0 : index
    %c0_21 = arith.constant 0 : index
    %c0_22 = arith.constant 0 : index
    %48 = vector.load %arg4[%c0_19, %c0_20, %c0_21, %c0_22] : memref<1x1x32x128xf32, #tpu.memory_space<vmem>>, vector<1x1x32x128xf32>
    %49 = vector.shape_cast %48 : vector<1x1x32x128xf32> to vector<32x128xf32>
    %50 = vector.shape_cast %47 : vector<32x128xf32> to vector<1x1x32x128xf32>
    tpu.vector_store %arg4[%c0_19, %c0_20, %c0_21, %c0_22], %50 {strides = array<i32>} : memref<1x1x32x128xf32, #tpu.memory_space<vmem>>, vector<1x1x32x128xf32>,
    return
  }
  func.func @transform_0(%arg0: i32) -> (i32, i32, i32, i32) {
    %c0_i32 = arith.constant 0 : i32
    %c0_i32_0 = arith.constant 0 : i32
    %c0_i32_1 = arith.constant 0 : i32
    %c0_i32_2 = arith.constant 0 : i32
    return %arg0, %c0_i32, %c0_i32_0, %c0_i32_1 : i32, i32, i32, i32
  }
  func.func @transform_1(%arg0: i32) -> (i32, i32) {
    %c0_i32 = arith.constant 0 : i32
    %c0_i32_0 = arith.constant 0 : i32
    %c0_i32_1 = arith.constant 0 : i32
    return %c0_i32, %c0_i32_0 : i32, i32
  }
  func.func @transform_2(%arg0: i32) -> (i32, i32) {
    %c0_i32 = arith.constant 0 : i32
    %c0_i32_0 = arith.constant 0 : i32
    %c0_i32_1 = arith.constant 0 : i32
    return %c0_i32, %c0_i32_0 : i32, i32
  }
  func.func @transform_3(%arg0: i32) -> (i32, i32, i32, i32) {
    %c0_i32 = arith.constant 0 : i32
    %c0_i32_0 = arith.constant 0 : i32
    %c0_i32_1 = arith.constant 0 : i32
    %c0_i32_2 = arith.constant 0 : i32
    return %arg0, %c0_i32, %c0_i32_0, %c0_i32_1 : i32, i32, i32, i32
  }
}

</mosaic_0001>

<bundles_post_ra>
// kernel: tpu_custom_call.1
= control target key start
LH: loop header
LB: loop body
LE: loop exit
PB: predicated region body
PF: predicated region fallthrough
CT: control target
= control target key end

     0   :  { %8 = vsyncpa [#allocation3], 0  ;;  %s991_s0 = inlined_call_operand.vmem [shape: f32[2,1,8,134], index: 0, kind: input, shape index: {}]   ;;  %s992_s1 = inlined_call_operand.hbm [shape: f32[32,56], index: 1, kind: input, shape index: {}]   ;;  %s993_s2 = inlined_call_operand.vmem [shape: f32[32,3], index: 2, kind: input, shape index: {}]   ;;  %s994_s3 = inlined_call_operand.hbm [shape: f32[2,1,32,128], index: 3, kind: output, shape index: {}]  }
   0x1   :  { %9 = vsyncpa [#allocation4], 0 }
   0x2   :  { %11 = vsyncpa [#allocation4 + $0x1], 0  ;;  %s824_s12 = smov 0   ;;  %s826_s13 = smov 0  }
   0x3   :  { %s828_s14 = smov 0   ;;  %s830_s15 = smov 0  }
   0x4 LB: > { %s845_s16 = sadd.s32 4294967295, %s788_s15   ;;  %s538_s17 = sadd.s32 4294967294, %s788_s15   ;;  %s788_s15 = sphi %s830_s15, %s1000_s15   ;;  %s784_s14 = sphi %s828_s14, %s999_s14   ;;  %s780_s13 = sphi %s826_s13, %s998_s13   ;;  %s776_s12 = sphi %s824_s12, %s997_s12  }
   0x5   : > { %s849_s18 = sadd.s32 1, %s788_s15   ;;  %s92_s19 = sadd.s32 1, %s784_s14 }
   0x6   : > { %s89_s20 = ssub.s32 %s788_s15, %s849_s18  ;;  %p102_p0 = scmp.ne.s32.totalorder %s784_s14, %s780_s13 }
   0x7   : > { %p90_p1 = scmp.eq.s32.totalorder %s89_s20, 0  ;;  %p103_p2 = scmp.eq.s32.totalorder %s845_s16, 1 }
   0x8   : > { %p108_p3 = scmp.ne.s32.totalorder %s780_s13, %s776_s12  ;;  %p109_p4 = scmp.eq.s32.totalorder %s538_s17, 1 }
   0x9   : > { %s860_s21 = scalar_select %p90_p1, %s784_s14, %s92_s19  }
   0xa   : > { %p862_p5 = por %p103_p2, %p102_p0  ;;  %p866_p6 = por %p109_p4, %p108_p3 }
   0xb   : > { %p539_p7 = scmp.ge.s32.totalorder %s788_s15, 1  ;;  %p116_p8 = scmp.lt.s32.totalorder %s788_s15, 3 }
   0xc   : > { %p601_p9 = scmp.eq.s32.totalorder %s845_s16, 0  ;;  %s127_s26 = sshll.u32 %s992_s1, 4  ;;  %s128_s26 = int_to_ptr.hbm [resolvable:$true] %s127_s26 }
   0xd   : > { %p117_p10 = pnand %p539_p7, %p116_p8  ;;  %s790_s27 = smov [#allocation2]  }
   0xe   : > { %s129_s28 = sshll.u32 %s790_s27, 4  ;;  %s791_s29 = smov 128   ;;  %s130_s28 = int_to_ptr.vmem [resolvable:$true] %s129_s28 }
   0xf   : > { %p593_p11 = pneg %p117_p10  ;;  %s792_s30 = smov 8  }
  0x10   : > { %156 = sbr.rel (%p117_p10) target bundleno = 1007 (0x3ef), region = 32 }
  0x11   : > { %p594_p12 = pnand %p601_p9, %p593_p11 }
  0x13   : > { %596 = dma.hbm_to_vmem [thread:$0]  (!%p594_p12), %s128_s26, 512, %s130_s28, [#allocation3], %s791_s29, %s791_s29, %s792_s30  }
  0x15   : > { %767 = dma.done.wait (%p601_p9), [#allocation3], 512  }
  0x16   : > { %769 = vsyncadd (%p601_p9), [#allocation3], 4294966784  ;;  %p181_p13 = scmp.lt.s32.totalorder %s845_s16, 1  ;;  %s793_s9 = smov 122   ;;  %v893_v3 = vld [vmem:[%s993_s2 + $0x8] sm:$0xff]  ;;  %v898_v4 = vld [vmem:[%s993_s2] sm:$0xff] }
  0x17   : > { %s794_s10 = smov 124   ;;  %s795_s11 = smov 126   ;;  %v799_v5 = vmov 0   ;;  %v903_v6 = vld [vmem:[%s993_s2 + $0x10] sm:$0xff]  ;;  %vm229_vm0 = vcmask 998400   ;;  %v911_v10 = vld [vmem:[%s993_s2 + $0x18] sm:$0xff] }
  0x18   : > { %s182_s4 = scalar_select %p181_p13, %s845_s16, 1  ;;  %681 = vset.pattern.permute.xlu1 %v799_v5  ;;  %680 = vset.pattern.permute.xlu0 %v799_v5  ;;  %vm222_vm1 = vcmask 1006592   ;;  %vm215_vm2 = vcmask 1014784   ;;  %vm208_vm3 = vcmask 1022976   ;;  %vm201_vm4 = vcmask 1031168   ;;  %v232_v32 = vld [vmem:[#allocation2] sm:$0xff] }
  0x19   : > { %s796_s17 = smov 123   ;;  %s797_s19 = smov 125   ;;  %682 = vset.pattern.permute.xlu2 %v799_v5  ;;  %vm194_vm5 = vcmask 1039360   ;;  %vm260_vm6 = vcmask 457728   ;;  %v233_v33 = vld [vmem:[#allocation2 + $0x8] sm:$0xff]  ;;  %v234_v34 = vld [vmem:[#allocation2 + $0x10] sm:$0xff] }
  0x1a   : > { %s556_s5 = sshll.u32 %s182_s4, 4  ;;  %s798_s20 = smov 127   ;;  %v235_v35 = vld [vmem:[#allocation2 + $0x18] sm:$0xff]  ;;  %vm311_vm7 = vcmask 1040384  }
  0x1b   : > { %s185_s8 = scalar_lea.vmem %s991_s0, %s556_s5  ;;  %s557_s24 = sshll.u32 %s845_s16, 5 }
  0x1c   : > { %v887_v0 = vld [vmem:[%s185_s8] sm:$0xff]  ;;  %v187_v1 = vld [vmem:[%s185_s8 + $0x8] sm:$0xff]  ;;  %s460_s27 = scalar_lea.hbm %s994_s3, %s557_s24 }
  0x1d   : > { %v650_v2 = vpack.i.bf16 %v187_v1, %v887_v0  ;;  %s463_s29 = sshll.u32 %s460_s27, 4  ;;  %s464_s29 = int_to_ptr.hbm [resolvable:$true] %s463_s29 }
  0x1e   : > { %s736_s30 = sshra.s32 %s464_s29, 4  ;;  %s737_s30 = int_to_ptr.hbm [resolvable:$true] %s736_s30 }
  0x1f   : > { %651 = vrot.lane.b32.xlu0 %v650_v2, %s793_s9  ;;  %661 = vrot.lane.b32.xlu1 %v650_v2, %s794_s10  ;;  %s738_s4 = scalar_lea.hbm %s737_s30, 32  ;;  %p743_p3 = scmp.lt.s32.totalorder %s737_s30, %s994_s3 }
  0x20   : > { %671 = vrot.lane.b32.xlu2 %v650_v2, %s795_s11  ;;  %p739_p0 = scmp.ne.s32.totalorder %s737_s30, %s738_s4 }
  0x22   : > { %p740_p1 = pnand %p739_p0, %p862_p5 }
  0x24   : > { %p741_p2 = pneg %p740_p1 }
  0x27   : > { %656 = vrot.lane.b32.xlu0 %v650_v2, %s796_s17  ;;  %666 = vrot.lane.b32.xlu1 %v650_v2, %s797_s19  ;;  %s178_s17 = sand.u32 1, %s780_s13  }
  0x28   : > { %676 = vrot.lane.b32.xlu2 %v650_v2, %s798_s20  ;;  %s544_s19 = sshll.u32 %s178_s17, 5  ;;  %s449_s16 = scalar_lea.sflag [#allocation4], %s178_s17 }
  0x29   : > { %s948_s20 = scalar_lea.vmem [#allocation5], %s544_s19 }
  0x2a   : > { %s461_s28 = sshll.u32 %s948_s20, 4  ;;  %s462_s28 = int_to_ptr.vmem [resolvable:$true] %s461_s28 }
  0x2f   : > { %247 = vperm.xlu1 %681, %v893_v3   ;;  %242 = vperm.xlu0 %680, %v898_v4  }
  0x30   : > { %252 = vperm.xlu2 %682, %v903_v6  }
  0x37   : > { %257 = vperm.xlu1 %681, %v911_v10  }
  0x7a   : > { %v672_v7 = vpop.permute.xlu2 %671 }
  0x7b   : > { %v674_v24 = vunpack.i.h.bf16 %v672_v7  ;;  %v673_v25 = vunpack.i.l.bf16 %v672_v7 }
  0x7d   : > { %v202_v30 = vsel %vm201_vm4, %v673_v25, %v674_v24 }
  0x82   : > { %v677_v22 = vpop.permute.xlu2 %676 }
  0x83   : > { %v679_v27 = vunpack.i.h.bf16 %v677_v22  ;;  %v678_v28 = vunpack.i.l.bf16 %v677_v22 }
  0x85   : > { %v195_v31 = vsel %vm194_vm5, %v678_v28, %v679_v27 }
  0x8a   : > { %v253_v42 = vpop.permute.xlu2 %252 }
  0x91   : > { %v652_v8 = vpop.permute.xlu0 %651  ;;  %v662_v9 = vpop.permute.xlu1 %661 }
  0x92   : > { %v654_v11 = vunpack.i.h.bf16 %v652_v8  ;;  %v653_v12 = vunpack.i.l.bf16 %v652_v8  ;;  %v664_v14 = vunpack.i.h.bf16 %v662_v9  ;;  %v663_v15 = vunpack.i.l.bf16 %v662_v9 }
  0x94   : > { %v230_v13 = vsel %vm229_vm0, %v653_v12, %v654_v11  ;;  %v216_v26 = vsel %vm215_vm2, %v663_v15, %v664_v14 }
  0x95   : > { %282 = vmatpush.msra.mxu0 %v230_v13  ;;  %558 = vmatpush.msra.mxu1 %v230_v13 }
  0x96   : > { %559 = vmatpush.msra.mxu2 %v230_v13  ;;  %560 = vmatpush.msra.mxu3 %v230_v13 }
  0x99   : > { %v657_v16 = vpop.permute.xlu0 %656  ;;  %v667_v17 = vpop.permute.xlu1 %666 }
  0x9a   : > { %v659_v18 = vunpack.i.h.bf16 %v657_v16  ;;  %v658_v19 = vunpack.i.l.bf16 %v657_v16  ;;  %v669_v20 = vunpack.i.h.bf16 %v667_v17  ;;  %v668_v21 = vunpack.i.l.bf16 %v667_v17 }
  0x9c   : > { %v223_v23 = vsel %vm222_vm1, %v658_v19, %v659_v18  ;;  %v209_v29 = vsel %vm208_vm3, %v668_v21, %v669_v20 }
  0x9d   : > { %283 = vmatpush.msra.mxu0 %v223_v23  ;;  %561 = vmatpush.msra.mxu1 %v223_v23 }
  0x9e   : > { %562 = vmatpush.msra.mxu2 %v223_v23  ;;  %563 = vmatpush.msra.mxu3 %v223_v23 }
  0x9f   : > { %284 = vmatpush.msra.mxu0 %v216_v26  ;;  %564 = vmatpush.msra.mxu1 %v216_v26 }
  0xa0   : > { %565 = vmatpush.msra.mxu2 %v216_v26  ;;  %566 = vmatpush.msra.mxu3 %v216_v26 }
  0xa1   : > { %285 = vmatpush.msra.mxu0 %v209_v29  ;;  %567 = vmatpush.msra.mxu1 %v209_v29  ;;  %v248_v36 = vpop.permute.xlu1 %247  ;;  %v243_v37 = vpop.permute.xlu0 %242 }
  0xa2   : > { %568 = vmatpush.msra.mxu2 %v209_v29  ;;  %569 = vmatpush.msra.mxu3 %v209_v29 }
  0xa3   : > { %286 = vmatpush.msra.mxu0 %v202_v30  ;;  %570 = vmatpush.msra.mxu1 %v202_v30 }
  0xa4   : > { %571 = vmatpush.msra.mxu2 %v202_v30  ;;  %572 = vmatpush.msra.mxu3 %v202_v30 }
  0xa5   : > { %287 = vmatpush.msra.mxu0 %v195_v31  ;;  %573 = vmatpush.msra.mxu1 %v195_v31 }
  0xa6   : > { %574 = vmatpush.msra.mxu2 %v195_v31  ;;  %575 = vmatpush.msra.mxu3 %v195_v31 }
  0xa7   : > { %288 = vmatpush.msra.mxu0 %v887_v0  ;;  %576 = vmatpush.msra.mxu1 %v887_v0 }
  0xa8   : > { %577 = vmatpush.msra.mxu2 %v887_v0  ;;  %578 = vmatpush.msra.mxu3 %v887_v0 }
  0xa9   : > { %547 = vmatmul.msk.f32.vlgmr.msra.gmra.mxu0 %vm260_vm6, %v232_v32  ;;  %548 = vmatmul.msk.f32.vlgmr.msra.gmra.mxu1 %vm260_vm6, %v233_v33  ;;  %v258_v47 = vpop.permute.xlu1 %257 }
  0xaa   : > { %549 = vmatmul.msk.f32.vlgmr.msra.gmra.mxu2 %vm260_vm6, %v234_v34  ;;  %550 = vmatmul.msk.f32.vlgmr.msra.gmra.mxu3 %vm260_vm6, %v235_v35 }
 0x126   : > { %v290_v38 = vpop.f32.mrf.mxu0  ;;  %v293_v39 = vpop.f32.mrf.mxu1 }
 0x127   : > { %v291_v40 = vadd.f32 %v290_v38, %v243_v37  ;;  %v294_v41 = vadd.f32 %v293_v39, %v248_v36 }
 0x129   : > { %v302_v45 = vadd.f32 %v294_v41, %v291_v40 }
 0x12d   : > { %v296_v43 = vpop.f32.mrf.mxu2  ;;  %v299_v44 = vpop.f32.mrf.mxu3 }
 0x12e   : > { %v297_v46 = vadd.f32 %v296_v43, %v253_v42  ;;  %v300_v49 = vadd.f32 %v299_v44, %v258_v47  ;;  %v800_v42 = vmov 2  }
 0x12f   : > { %683 = vset.pattern.permute.xlu1 %v800_v42  ;;  %687 = vset.pattern.permute.xlu0 %v800_v42 }
 0x130   : > { %v303_v48 = vadd.f32 %v302_v45, %v297_v46  ;;  %413 = vperm.xlu1 %683, %v898_v4   ;;  %685 = vset.pattern.permute.xlu2 %v800_v42 }
 0x132   : > { %v304_v50 = vadd.f32 %v303_v48, %v300_v49 }
 0x134   : > { %v305_v51 = vrot.slane %v304_v50, 4 }
 0x136   : > { %v306_v52 = vadd.f32 %v305_v51, %v304_v50 }
 0x138   : > { %v307_v53 = vrot.slane %v306_v52, 2 }
 0x13a   : > { %v308_v54 = vadd.f32 %v307_v53, %v306_v52 }
 0x13c   : > { %v309_v55 = vrot.slane %v308_v54, 1 }
 0x13e   : > { %v310_v56 = vadd.f32 %v309_v55, %v308_v54  ;;  %v801_v54 = vmov 1  }
 0x13f   : > { %684 = vset.pattern.permute.xlu1 %v801_v54 }
 0x140   : > { %v312_v57 = vsel %vm311_vm7, %v310_v56, 0.0 }
 0x141   : > { %313 = vadd.xlane.f32.xlu2 %v312_v57 }
 0x159   : > { %417 = vperm.xlu2 %685, %v893_v3  }
 0x1b4   : > { %v314_v58 = vpop.xlane.xlu2 %313 }
 0x1b5   : > { %v315_v59 = vrot.slane %v314_v58, 4 }
 0x1b7   : > { %v316_v60 = vadd.f32 %v315_v59, %v314_v58 }
 0x1b9   : > { %v317_v61 = vrot.slane %v316_v60, 2 }
 0x1bb   : > { %v318_v62 = vadd.f32 %v317_v61, %v316_v60  ;;  %v414_v60 = vpop.permute.xlu1 %413 }
 0x1bd   : > { %v319_v63 = vrot.slane %v318_v62, 1 }
 0x1bf   : > { %v320_v0 = vadd.f32 %v319_v63, %v318_v62 }
 0x1c1   : > { %579 = vpush %v320_v0  ;;  %v418_v0 = vpop.permute.xlu2 %417 }
 0x1f2   : > { %s580_s5 = spop %579 }
 0x1f3   : > { %s322_s6 = smul.f32 0.00024414063, %s580_s5 }
 0x1f5   : > { %v323_v1 = vstv %s322_s6 }
 0x1f6   : > { %v919_v2 = vsub.f32 %v291_v40, %v323_v1  ;;  %v921_v5 = vsub.f32 %v294_v41, %v323_v1  ;;  %v923_v7 = vsub.f32 %v297_v46, %v323_v1  ;;  %v925_v8 = vsub.f32 %v300_v49, %v323_v1 }
 0x1f8   : > { %v328_v9 = vmul.f32 %v919_v2, %v919_v2  ;;  %v329_v11 = vmul.f32 %v921_v5, %v921_v5  ;;  %v330_v12 = vmul.f32 %v923_v7, %v923_v7  ;;  %v331_v14 = vmul.f32 %v925_v8, %v925_v8 }
 0x1fa   : > { %v332_v13 = vadd.f32 %v329_v11, %v328_v9 }
 0x1fc   : > { %v333_v15 = vadd.f32 %v332_v13, %v330_v12 }
 0x1fe   : > { %v334_v16 = vadd.f32 %v333_v15, %v331_v14 }
 0x200   : > { %v335_v17 = vrot.slane %v334_v16, 4 }
 0x202   : > { %v336_v18 = vadd.f32 %v335_v17, %v334_v16 }
 0x204   : > { %v337_v19 = vrot.slane %v336_v18, 2 }
 0x206   : > { %v338_v20 = vadd.f32 %v337_v19, %v336_v18 }
 0x208   : > { %v339_v21 = vrot.slane %v338_v20, 1 }
 0x20a   : > { %v340_v22 = vadd.f32 %v339_v21, %v338_v20 }
 0x20c   : > { %v341_v23 = vsel %vm311_vm7, %v340_v22, 0.0 }
 0x20d   : > { %342 = vadd.xlane.f32.xlu0 %v341_v23 }
 0x221   : > { %425 = vperm.xlu0 %687, %v911_v10  }
 0x280   : > { %v343_v24 = vpop.xlane.xlu0 %342 }
 0x281   : > { %v344_v25 = vrot.slane %v343_v24, 4 }
 0x283   : > { %v345_v26 = vadd.f32 %v344_v25, %v343_v24 }
 0x285   : > { %v346_v27 = vrot.slane %v345_v26, 2 }
 0x287   : > { %v347_v28 = vadd.f32 %v346_v27, %v345_v26 }
 0x289   : > { %v348_v29 = vrot.slane %v347_v28, 1 }
 0x28b   : > { %v349_v30 = vadd.f32 %v348_v29, %v347_v28 }
 0x28d   : > { %581 = vpush %v349_v30 }
 0x293   : > { %v426_v13 = vpop.permute.xlu0 %425 }
 0x2be   : > { %s582_s7 = spop %581 }
 0x2bf   : > { %s351_s8 = smul.f32 0.00024420026, %s582_s7  ;;  %s742_s7 = scalar_lea.hbm %s994_s3, 64 }
 0x2c0   : > { %p744_p4 = scmp.lt.s32.totalorder %s742_s7, %s738_s4 }
 0x2c1   : > { %v352_v31 = vstv %s351_s8 }
 0x2c2   : > { %688 = vrsqrt.f32 %v352_v31  ;;  %vm360_vm8 = vcmp.eq.f32.partialorder %v352_v31, inf  ;;  %v363_v39 = vand.u32 2147483648, %v352_v31  ;;  %vm362_vm9 = vcmp.eq.f32.partialorder %v352_v31, 0.0  ;;  %p745_p7 = por %p744_p4, %p743_p3 }
 0x2c4   : > { %p746_p8 = pnand %p745_p7, %p741_p2 }
 0x2c8   : > { %v689_v32 = vpop.eup %688 }
 0x2c9   : > { %v354_v33 = vmul.f32 %v689_v32, %v352_v31 }
 0x2cb   : > { %v355_v34 = vmul.f32 %v689_v32, %v354_v33 }
 0x2cd   : > { %v356_v35 = vmul.f32 0.5, %v355_v34 }
 0x2cf   : > { %v357_v36 = vsub.f32 1.5, %v356_v35 }
 0x2d1   : > { %v358_v37 = vmul.f32 %v689_v32, %v357_v36 }
 0x2d3   : > { %v359_v38 = vmul.f32 %v358_v37, %v352_v31 }
 0x2d5   : > { %v361_v40 = vsel %vm360_vm8, %v352_v31, %v359_v38 }
 0x2d6   : > { %v364_v41 = vsel %vm362_vm9, %v363_v39, %v361_v40 }
 0x2d7   : > { %583 = vpush %v364_v41 }
 0x308   : > { %s584_s9 = spop %583 }
 0x309   : > { %s366_s10 = sadd.f32 1e-05, %s584_s9 }
 0x30b   : > { %v367_v43 = vstv %s366_s10 }
 0x30c   : > { %690 = vrcp.f32 %v367_v43  ;;  %v379_v47 = vand.u32 2147483648, %v367_v43  ;;  %v377_v49 = vand.u32 2147483647, %v367_v43  ;;  %vm373_vm11 = vweird.f32 %v367_v43 }
 0x30e   : > { %v380_v51 = vor.u32 1.1754944e-38, %v379_v47  ;;  %vm378_vm13 = vcmp.eq.f32.partialorder %v377_v49, 8.507059e+37 }
 0x312   : > { %v691_v44 = vpop.eup %690 }
 0x313   : > { %v369_v45 = vmul.f32 %v691_v44, %v367_v43  ;;  %vm374_vm10 = vweird.f32 %v691_v44 }
 0x314   : > { %vm375_vm12 = vmor %vm373_vm11, %vm374_vm10 }
 0x315   : > { %v370_v46 = vsub.f32 1.0, %v369_v45 }
 0x317   : > { %v371_v48 = vmul.f32 %v691_v44, %v370_v46 }
 0x319   : > { %v372_v50 = vadd.f32 %v691_v44, %v371_v48 }
 0x31b   : > { %v376_v52 = vsel %vm375_vm12, %v691_v44, %v372_v50 }
 0x31c   : > { %v381_v53 = vsel %vm378_vm13, %v380_v51, %v376_v52 }
 0x31d   : > { %585 = vpush %v381_v53 }
 0x34e   : > { %s586_s11 = spop %585 }
 0x34f   : > { %v383_v55 = vstv %s586_s11 }
 0x350   : > { %v384_v56 = vmul.f32 %v383_v55, %v898_v4  ;;  %v385_v57 = vmul.f32 %v383_v55, %v893_v3  ;;  %v386_v58 = vmul.f32 %v383_v55, %v903_v6  ;;  %v387_v59 = vmul.f32 %v383_v55, %v911_v10 }
 0x352   : > { %390 = vperm.xlu1 %684, %v384_v56  }
 0x35a   : > { %395 = vperm.xlu1 %684, %v385_v57  }
 0x362   : > { %400 = vperm.xlu1 %684, %v386_v58  }
 0x36a   : > { %405 = vperm.xlu1 %684, %v387_v59  }
 0x372   : > { %686 = vset.pattern.permute.xlu1 %v800_v42 }
 0x373   : > { %421 = vperm.xlu1 %686, %v903_v6  }
 0x3c4   : > { %v391_v61 = vpop.permute.xlu1 %390 }
 0x3c5   : > { %v408_v62 = vmul.f32 %v391_v61, %v919_v2 }
 0x3c7   : > { %v428_v4 = vadd.f32 %v414_v60, %v408_v62 }
 0x3c9   : > { %vm432_vm14 = vcmp.gt.f32.partialorder %v428_v4, 0.0  ;;  %v436_v3 = vmul.f32 0.2, %v428_v4 }
 0x3cb   : > { %v440_v63 = vsel %vm432_vm14, %v428_v4, %v436_v3 }
 0x3cc   : > { %444 = vst [vmem:[%s948_s20] sm:$0xff] %v440_v63  ;;  %v396_v10 = vpop.permute.xlu1 %395 }
 0x3cd   : > { %v409_v6 = vmul.f32 %v396_v10, %v921_v5 }
 0x3cf   : > { %v429_v1 = vadd.f32 %v418_v0, %v409_v6 }
 0x3d1   : > { %vm433_vm15 = vcmp.gt.f32.partialorder %v429_v1, 0.0  ;;  %v437_v2 = vmul.f32 0.2, %v429_v1 }
 0x3d3   : > { %v441_v9 = vsel %vm433_vm15, %v429_v1, %v437_v2 }
 0x3d4   : > { %445 = vst [vmem:[%s948_s20 + $0x8] sm:$0xff] %v441_v9  ;;  %v401_v11 = vpop.permute.xlu1 %400 }
 0x3d5   : > { %v410_v17 = vmul.f32 %v401_v11, %v923_v7 }
 0x3dc   : > { %v406_v12 = vpop.permute.xlu1 %405 }
 0x3dd   : > { %v411_v14 = vmul.f32 %v406_v12, %v925_v8 }
 0x3df   : > { %v431_v15 = vadd.f32 %v426_v13, %v411_v14 }
 0x3e1   : > { %vm435_vm0 = vcmp.gt.f32.partialorder %v431_v15, 0.0  ;;  %v439_v16 = vmul.f32 0.2, %v431_v15 }
 0x3e3   : > { %v443_v5 = vsel %vm435_vm0, %v431_v15, %v439_v16 }
 0x3e4   : > { %447 = vst [vmem:[%s948_s20 + $0x18] sm:$0xff] %v443_v5 }
 0x3e5   : > { %v422_v18 = vpop.permute.xlu1 %421 }
 0x3e6   : > { %v430_v19 = vadd.f32 %v422_v18, %v410_v17 }
 0x3e8   : > { %vm434_vm1 = vcmp.gt.f32.partialorder %v430_v19, 0.0  ;;  %v438_v8 = vmul.f32 0.2, %v430_v19 }
 0x3ea   : > { %v442_v20 = vsel %vm434_vm1, %v430_v19, %v438_v8 }
 0x3eb   : > { %446 = vst [vmem:[%s948_s20 + $0x10] sm:$0xff] %v442_v20 }
 0x3ec   : > { %749 = shalt.err (!%p746_p8)
}
 0x3ed   : > { %s802_s10 = smov 128   ;;  %s803_s11 = smov 8  }
 0x3ee   : > { %591 = dma.vmem_to_hbm [thread:$0]  (%p862_p5), %s462_s28, 512, %s464_s29, %s449_s16, %s802_s10, %s802_s10, %s803_s11  }
 0x3ef PF: > { %p603_p9 = scmp.ge.s32.totalorder %s788_s15, 2  ;;  %s478_s17 = sand.u32 1, %s776_s12  }
 0x3f0   : > { %s479_s19 = scalar_lea.sflag [#allocation4], %s478_s17 }
 0x3f1   : > { %p598_p10 = pnand %p603_p9, %p866_p6 }
 0x3f3   : > { %p599_p11 = pneg %p598_p10 }
 0x3f5   : > { %771 = dma.done.wait (%p599_p11), %s479_s19, 512  }
 0x3f6   : > { %773 = vsyncadd (%p599_p11), %s479_s19, 4294966784  ;;  %p14_p12 = scmp.ge.s32.totalorder %s849_s18, 4   ;;  %s997_s12 = smov %s780_s13 }
 0x3f7   : > { %s998_s13 = smov %s784_s14  ;;  %s999_s14 = smov %s860_s21 }
 0x3f8   : > { %s1000_s15 = smov %s849_s18  ;;  %16 = sbr.rel (!%p14_p12) target bundleno = 4 (0x4), region = 72 }
 0x3fd   :  { %485 = vsyncpa [#allocation3], 1 }
 0x3fe   :  { %487 = vsyncpa [#allocation3 + $0x1], 1 }
 0x3ff   :  { %488 = vsyncpa [#allocation4], 1 }
 0x400   :  { %490 = vsyncpa [#allocation4 + $0x1], 1 }

</bundles_post_ra>
